<compile_context>
chip_gen: v6e
topology: v6e:2x2x1
jax: 0.10.0
libtpu: 0.0.40
codegen_flags: <defaults>
</compile_context>

<pallas_src>
import jax
import jax.numpy as jnp
from jax.experimental import pallas as pl
from jax.experimental.pallas import tpu as pltpu


def _decoder_kernel(x_ref, w_ref, b_ref, o_ref):
    """Fused 1x1-conv + bias + log_softmax.

    x_ref : (1, C, tT)  NCW input tile (one batch element, one time tile)
    w_ref : (C, N)      conv weight (PyTorch (N, C, 1) re-laid-out as (C, N))
    b_ref : (1, N)      conv bias
    o_ref : (1, tT, N)  output log-probabilities
    """
    x = x_ref[0]                                             # (C, tT)
    # 1x1 conv == channel contraction: logits[t, n] = sum_c x[c, t] * w[c, n]
    logits = jax.lax.dot_general(
        x, w_ref[...],
        dimension_numbers=(((0,), (0,)), ((), ())),          # x.T @ w (transposed LHS)
        preferred_element_type=jnp.float32,
    )                                                        # (tT, N) f32
    logits = logits + b_ref[...].astype(jnp.float32)
    # numerically stable log_softmax over the class (lane) axis
    m = jnp.max(logits, axis=-1, keepdims=True)
    s = logits - m
    lse = jnp.log(jnp.sum(jnp.exp(s), axis=-1, keepdims=True))
    o_ref[0] = (s - lse).astype(o_ref.dtype)


def _pick_time_tile(T):
    # Lane-aligned time tiles keep the per-step VMEM footprint bounded at real bonito
    # lengths (T ~ 10k+) while satisfying the (8, 128) block constraint; fall back to
    # the full sequence for tiny demo shapes (block == full dim is always legal).
    for t in (1024, 512, 256, 128):
        if T % t == 0:
            return t
    return T


def decoder_forward(x_nct, w_cn, bias, *, time_tile=None):
    """x_nct: (B, features, T) float, exactly like the PyTorch module's NCW input.

    w_cn : (features, classes)  == torch_conv_weight[:, :, 0].T
    bias : (classes,)
    returns (B, T, classes) log-probabilities, matching the PyTorch forward.
    """
    B, C, T = x_nct.shape
    Cw, N = w_cn.shape
    assert C == Cw, (C, Cw)
    tT = time_tile if time_tile is not None else _pick_time_tile(T)
    assert T % tT == 0, (T, tT)

    b2 = bias.reshape(1, N).astype(jnp.float32)

    # TODO(synk): classes (N) is typically tiny (5) so the output last dim is not
    # lane-dense; padding N to 128 would need a post-kernel slice copy, so left as-is.
    return pl.pallas_call(
        _decoder_kernel,
        out_shape=jax.ShapeDtypeStruct((B, T, N), jnp.float32),
        grid_spec=pltpu.PrefetchScalarGridSpec(
            num_scalar_prefetch=0,
            grid=(B, T // tT),
            in_specs=[
                pl.BlockSpec((1, C, tT), lambda bi, ti: (bi, 0, ti)),
                pl.BlockSpec((C, N), lambda bi, ti: (0, 0)),
                pl.BlockSpec((1, N), lambda bi, ti: (0, 0)),
            ],
            out_specs=pl.BlockSpec((1, tT, N), lambda bi, ti: (bi, ti, 0)),
        ),
        compiler_params=pltpu.CompilerParams(
            # batch and time tiles are independent -> both parallel
            # (megacore sharding on v7x's 2 TCs; harmless on v5e/v6e).
            dimension_semantics=("parallel", "parallel"),
        ),
    )(x_nct, w_cn, b2)


if __name__ == "__main__":
    key = jax.random.PRNGKey(0)
    kx, kw, kb = jax.random.split(key, 3)

    B, C, T, N = 2, 32, 16, 5          # batch, features, time, classes
    x = jax.random.normal(kx, (B, C, T), jnp.float32)
    w = 0.3 * jax.random.normal(kw, (C, N), jnp.float32)     # (features, classes)
    b = 0.1 * jax.random.normal(kb, (N,), jnp.float32)

    out = decoder_forward(x, w, b)
    out = jax.block_until_ready(out)

    # pure-JAX reference of the PyTorch forward pass
    logits_ref = jnp.einsum("bct,cn->btn", x, w) + b
    ref = jax.nn.log_softmax(logits_ref, axis=-1)

    assert out.shape == (B, T, N), out.shape
    assert bool(jnp.all(jnp.isfinite(out)))
    assert bool(jnp.allclose(out, ref, atol=1e-5, rtol=1e-5)), float(
        jnp.max(jnp.abs(out - ref)))
    # rows of a log_softmax must exponentiate-and-sum to 1
    assert bool(jnp.allclose(jnp.sum(jnp.exp(out), axis=-1), 1.0, atol=1e-5))
    print("KERNEL_OK")
</pallas_src>

<mosaic_0001>
module attributes {stable_mosaic.version = 11 : i64} {
  func.func @_decoder_kernel(%arg0: i32, %arg1: i32, %arg2: memref<1x32x16xf32, #tpu.memory_space<vmem>>, %arg3: memref<32x5xf32, #tpu.memory_space<vmem>>, %arg4: memref<1x5xf32, #tpu.memory_space<vmem>>, %arg5: memref<1x16x5xf32, #tpu.memory_space<vmem>>) attributes {dimension_semantics = [#tpu.dimension_semantics<parallel>, #tpu.dimension_semantics<parallel>], iteration_bounds = array<i64: 2, 1>, scalar_prefetch = 0 : i64, scratch_operands = 0 : i64, tpu.core_type = #tpu.core_type<tc>, window_params = [{transform_indices = @transform_0, window_bounds = array<i64: 1, 32, 16>}, {pipeline_mode = #tpu.pipeline_mode<synchronous>, transform_indices = @transform_1, window_bounds = array<i64: 32, 5>}, {pipeline_mode = #tpu.pipeline_mode<synchronous>, transform_indices = @transform_2, window_bounds = array<i64: 1, 5>}, {transform_indices = @transform_3, window_bounds = array<i64: 1, 16, 5>}]} {
    %c0 = arith.constant 0 : index
    %c0_0 = arith.constant 0 : index
    %c0_1 = arith.constant 0 : index
    %0 = vector.load %arg2[%c0, %c0_0, %c0_1] : memref<1x32x16xf32, #tpu.memory_space<vmem>>, vector<1x32x16xf32>
    %1 = vector.shape_cast %0 : vector<1x32x16xf32> to vector<32x16xf32>
    %c0_2 = arith.constant 0 : index
    %c0_3 = arith.constant 0 : index
    %2 = vector.load %arg3[%c0_2, %c0_3] : memref<32x5xf32, #tpu.memory_space<vmem>>, vector<32x5xf32>
    %cst = arith.constant dense<0.000000e+00> : vector<16x5xf32>
    %3 = tpu.matmul %1, %2, %cst {dimension_numbers = #tpu.dot_dimension_numbers<[0], [0], [1], [1], [0, 1, 1, 1], [], []>} : vector<32x16xf32>, vector<32x5xf32>, vector<16x5xf32> -> vector<16x5xf32>
    %c0_4 = arith.constant 0 : index
    %c0_5 = arith.constant 0 : index
    %4 = vector.load %arg4[%c0_4, %c0_5] : memref<1x5xf32, #tpu.memory_space<vmem>>, vector<1x5xf32>
    %5 = vector.broadcast %4 : vector<1x5xf32> to vector<16x5xf32>
    %6 = arith.addf %3, %5 : vector<16x5xf32>
    %cst_6 = arith.constant dense<0xFF800000> : vector<16xf32>
    %7 = vector.multi_reduction <maximumf>, %6, %cst_6 [1] : vector<16x5xf32> to vector<16xf32>
    %8 = vector.shape_cast %7 : vector<16xf32> to vector<16x1xf32>
    %9 = vector.broadcast %8 : vector<16x1xf32> to vector<16x5xf32>
    %10 = arith.subf %6, %9 : vector<16x5xf32>
    %11 = math.exp %10 : vector<16x5xf32>
    %cst_7 = arith.constant dense<0.000000e+00> : vector<16xf32>
    %12 = vector.multi_reduction <add>, %11, %cst_7 [1] : vector<16x5xf32> to vector<16xf32>
    %13 = vector.shape_cast %12 : vector<16xf32> to vector<16x1xf32>
    %14 = math.log %13 : vector<16x1xf32>
    %15 = vector.broadcast %14 : vector<16x1xf32> to vector<16x5xf32>
    %16 = arith.subf %10, %15 : vector<16x5xf32>
    %c0_8 = arith.constant 0 : index
    %c0_9 = arith.constant 0 : index
    %c0_10 = arith.constant 0 : index
    %17 = vector.load %arg5[%c0_8, %c0_9, %c0_10] : memref<1x16x5xf32, #tpu.memory_space<vmem>>, vector<1x16x5xf32>
    %18 = vector.shape_cast %17 : vector<1x16x5xf32> to vector<16x5xf32>
    %19 = vector.shape_cast %16 : vector<16x5xf32> to vector<1x16x5xf32>
    tpu.vector_store %arg5[%c0_8, %c0_9, %c0_10], %19 {strides = array<i32>} : memref<1x16x5xf32, #tpu.memory_space<vmem>>, vector<1x16x5xf32>,
    return
  }
  func.func @transform_0(%arg0: i32, %arg1: i32) -> (i32, i32, i32) {
    %c0_i32 = arith.constant 0 : i32
    %c0_i32_0 = arith.constant 0 : i32
    return %arg0, %c0_i32, %arg1 : i32, i32, i32
  }
  func.func @transform_1(%arg0: i32, %arg1: i32) -> (i32, i32) {
    %c0_i32 = arith.constant 0 : i32
    %c0_i32_0 = arith.constant 0 : i32
    %c0_i32_1 = arith.constant 0 : i32
    return %c0_i32, %c0_i32_0 : i32, i32
  }
  func.func @transform_2(%arg0: i32, %arg1: i32) -> (i32, i32) {
    %c0_i32 = arith.constant 0 : i32
    %c0_i32_0 = arith.constant 0 : i32
    %c0_i32_1 = arith.constant 0 : i32
    return %c0_i32, %c0_i32_0 : i32, i32
  }
  func.func @transform_3(%arg0: i32, %arg1: i32) -> (i32, i32, i32) {
    %c0_i32 = arith.constant 0 : i32
    %c0_i32_0 = arith.constant 0 : i32
    return %arg0, %arg1, %c0_i32 : i32, i32, i32
  }
}

</mosaic_0001>

<bundles_post_ra>
// kernel: tpu_custom_call.1
= control target key start
LH: loop header
LB: loop body
LE: loop exit
PB: predicated region body
PF: predicated region fallthrough
CT: control target
= control target key end

     0   :  { %s558_s12 = smov 0   ;;  %s560_s13 = smov 0   ;;  %s616_s0 = inlined_call_operand.vmem [shape: f32[2,32,16], index: 0, kind: input, shape index: {}]   ;;  %s617_s1 = inlined_call_operand.vmem [shape: f32[32,5], index: 1, kind: input, shape index: {}]   ;;  %s618_s2 = inlined_call_operand.vmem [shape: f32[1,5], index: 2, kind: input, shape index: {}]   ;;  %s619_s3 = inlined_call_operand.vmem [shape: f32[2,16,5], index: 3, kind: output, shape index: {}]  }
   0x1   :  { %s562_s14 = smov 0  }
   0x2 LB: > { %s25_s15 = sadd.s32 1, %s532_s13  ;;  %p452_p0 = scmp.ge.s32.totalorder %s536_s14, 1  ;;  %s536_s14 = sphi %s562_s14, %s13_s14   ;;  %s532_s13 = sphi %s560_s13, %s621_s13   ;;  %s528_s12 = sphi %s558_s12, %s620_s12  }
   0x3   : > { %p27_p1 = scmp.ge.s32.totalorder %s25_s15, 2  ;;  %p156_p2 = scmp.lt.s32.totalorder %s536_s14, 3 }
   0x5   : > { %s623_s15 = smov (%p27_p1, %s25_s15), 0  ;;  %p157_p3 = pnand %p452_p0, %p156_p2 }
   0x6   : > { %p187_p4 = scmp.lt.s32.totalorder (!%p157_p3), %s528_s12, 1 }
   0x7   : > { %160 = sbr.rel (%p157_p3) target bundleno = 661 (0x295), region = 32 }
   0xc   : > { %v212_v0 = vld [vmem:[%s617_s1 + $0x18] sm:$0xff]  ;;  %v211_v1 = vld [vmem:[%s617_s1 + $0x10] sm:$0xff]  ;;  %s625_s12 = smov (!%p187_p4, %s528_s12), 1  ;;  %v210_v2 = vld [vmem:[%s617_s1 + $0x8] sm:$0xff]  ;;  %vm252_vm0 = vcmask 261120   ;;  %vm334_vm1 = vcmask 39936  }
   0xd   : > { %470 = vmatprep.subr.mxu0 %v212_v0  ;;  %s462_s22 = sshll.u32 %s625_s12, 5  ;;  %v209_v3 = vld [vmem:[%s617_s1] sm:$0xff]  ;;  %s463_s30 = sshll.u32 %s625_s12, 4 }
   0xe   : > { %471 = vmatpush3.msra.mxu0 %v212_v0  ;;  %s194_s27 = scalar_lea.vmem %s616_s0, %s462_s22  ;;  %v457_v11 = vld [vmem:[%s618_s2] ss:$0 sm:$0xff]  ;;  %s203_s6 = scalar_lea.vmem %s619_s3, %s463_s30 }
   0xf   : > { %472 = vmatprep.subr.mxu0 %v211_v1  ;;  %v205_v4 = vld [vmem:[%s194_s27] sm:$0xff]  ;;  %v206_v5 = vld [vmem:[%s194_s27 + $0x8] sm:$0xff]  ;;  %v207_v6 = vld [vmem:[%s194_s27 + $0x10] sm:$0xff] }
  0x10   : > { %473 = vmatpush3.msra.mxu0 %v211_v1  ;;  %220 = vxpose.xlu0.b32.start [1/4] (short) (narrow) %v205_v4, 16  ;;  %v208_v7 = vld [vmem:[%s194_s27 + $0x18] sm:$0xff] }
  0x11   : > { %474 = vmatprep.subr.mxu0 %v210_v2 }
  0x12   : > { %475 = vmatpush3.msra.mxu0 %v210_v2 }
  0x13   : > { %476 = vmatprep.subr.mxu0 %v209_v3 }
  0x14   : > { %477 = vmatpush3.msra.mxu0 %v209_v3  ;;  %221 = vxpose.xlu0.b32.cont [2/4] (short) (narrow) %v206_v5, 16 }
  0x18   : > { %222 = vxpose.xlu0.b32.cont [3/4] (short) (narrow) %v207_v6, 16 }
  0x1c   : > { %223 = vxpose.xlu0.b32.end [4/4] (short) (narrow) %v208_v7, 16 }
  0x8c   : > { %v236_v8 = vpop.trf.xlu0 }
  0x8d   : > { %478 = vmatprep.mubr.msk.f32.mxu0 %vm252_vm0, %v236_v8 }
  0x90   : > { %v237_v9 = vpop.trf.xlu0 }
  0x91   : > { %479 = vmatmul.mubr.msk.f32.vlgmr.msra.gmra.mxu0 %vm252_vm0, %v237_v9 }
 0x151   : > { %v480_v10 = vpop.f32.mrf.mxu0 }
 0x152   : > { %v331_v14 = vadd.f32 %v480_v10, %v457_v11 }
 0x153   : > { %v325_v12 = vpop.f32.mrf.mxu0 }
 0x154   : > { %v326_v13 = vadd.f32 %v457_v11, %v325_v12  ;;  %v338_v16 = vsel %vm334_vm1, %v331_v14, -inf }
 0x156   : > { %v335_v15 = vsel %vm334_vm1, %v326_v13, -inf }
 0x157   : > { %336 = vmax.xlane.f32.xlu1 %v335_v15 }
 0x15b   : > { %339 = vmax.xlane.f32.xlu1 %v338_v16 }
 0x1e0   : > { %v337_v17 = vpop.xlane.xlu1 %336 }
 0x1e1   : > { %v341_v18 = vsub.f32 %v326_v13, %v337_v17 }
 0x1e3   : > { %v343_v19 = vmul.f32 1.442695, %v341_v18 }
 0x1e4   : > { %v340_v20 = vpop.xlane.xlu1 %339 }
 0x1e5   : > { %506 = vpow2.f32 %v343_v19  ;;  %v342_v21 = vsub.f32 %v331_v14, %v340_v20 }
 0x1e7   : > { %v345_v22 = vmul.f32 1.442695, %v342_v21 }
 0x1e9   : > { %508 = vpow2.f32 %v345_v22 }
 0x1f2   : > { %v507_v23 = vpop.eup %506 }
 0x1f3   : > { %v347_v24 = vsel %vm334_vm1, %v507_v23, 0.0 }
 0x1f4   : > { %348 = vadd.xlane.f32.xlu1 %v347_v24 }
 0x1f6   : > { %v509_v25 = vpop.eup %508 }
 0x1f7   : > { %v350_v26 = vsel %vm334_vm1, %v509_v25, 0.0 }
 0x1f8   : > { %351 = vadd.xlane.f32.xlu1 %v350_v26 }
 0x27d   : > { %v349_v27 = vpop.xlane.xlu1 %348 }
 0x27e   : > { %510 = vlog2.f32 %v349_v27 }
 0x281   : > { %v352_v28 = vpop.xlane.xlu1 %351 }
 0x282   : > { %512 = vlog2.f32 %v352_v28 }
 0x28b   : > { %v511_v29 = vpop.eup %510 }
 0x28c   : > { %v354_v30 = vmul.f32 0.6931472, %v511_v29 }
 0x28e   : > { %v357_v31 = vsub.f32 %v341_v18, %v354_v30 }
 0x28f   : > { %v513_v32 = vpop.eup %512 }
 0x290   : > { %359 = vst.msk [vmem:[%s203_s6] sm:$0xff] %vm334_vm1, %v357_v31  ;;  %v356_v33 = vmul.f32 0.6931472, %v513_v32 }
 0x292   : > { %v358_v34 = vsub.f32 %v342_v21, %v356_v33 }
 0x294   : > { %360 = vst.msk [vmem:[%s203_s6 + $0x8] sm:$0xff] %vm334_vm1, %v358_v34 }
 0x295 PF: > { %s13_s14 = sadd.s32 1, %s536_s14   ;;  %s620_s12 = smov %s532_s13 }
 0x296   : > { %p10_p5 = scmp.ge.s32.totalorder %s13_s14, 4   ;;  %s621_s13 = smov %s623_s15 }
 0x298   :  { %12 = sbr.rel (!%p10_p5) target bundleno = 2 (0x2), region = 62 }

</bundles_post_ra>
